<compile_context>
chip_gen: v6e
topology: v6e:2x2x1
jax: 0.10.0
libtpu: 0.0.40
codegen_flags: <defaults>
</compile_context>

<pallas_src>
import functools

import jax
import jax.numpy as jnp
import numpy as np
from jax import lax
from jax.experimental import pallas as pl
from jax.experimental.pallas import tpu as pltpu


def _tmse_kernel(count_ref, pred_ref, sim_ref, maskn_ref, o_ref, *, threshold, sigma):
    # count_ref: (N,) int32 in SMEM (scalar prefetch)
    # pred_ref, sim_ref: (1, C, T); maskn_ref: (1, 1, T)   (mask of frame t+1)
    # o_ref: (1, 1, 1)
    b = pl.program_id(0)
    cnt = count_ref[b]                               # number of valid frames T'

    p = pred_ref[0].astype(jnp.float32)              # (C, T) compacted logits
    s = sim_ref[0].astype(jnp.float32)               # (C, T) compacted similarity feats
    mkn = maskn_ref[0].astype(jnp.float32)           # (1, T) mask of frame t+1

    C, T = p.shape
    neg = jnp.float32(-1e30)
    tiny = jnp.float32(1e-30)

    # Validity masks built in-kernel from the per-batch count (free VPU work).
    t_idx = lax.broadcasted_iota(jnp.int32, (1, T), 1)
    fm_b = t_idx < cnt                               # valid frames 0..cnt-1
    pm = (t_idx < (cnt - 1)).astype(jnp.float32)     # valid pair columns 0..cnt-2

    # Shared-max, single-exp logsumexp for both temporal softmax windows:
    #   la - lb = (p[:,t+1] - p[:,t]) - (log sum_a - log sum_b)
    # sum_a over frames 1..cnt-1, sum_b over frames 0..cnt-2.
    p_m = jnp.where(fm_b, p, neg)                    # invalid columns -> -1e30
    rowmax = jnp.max(p_m, axis=1, keepdims=True)     # (C, 1)
    e = jnp.exp(p_m - rowmax)                        # (C, T); exactly 0 at invalid cols
    S = jnp.sum(e, axis=1, keepdims=True)            # frames 0..cnt-1
    sum_a = jnp.maximum(S - e[:, :1], tiny)          # frames 1..cnt-1 (merged reduce)
    sum_b = jnp.maximum(jnp.sum(e * pm, axis=1, keepdims=True), tiny)  # 0..cnt-2
    lse_diff = jnp.log(sum_a) - jnp.log(sum_b)       # (C, 1); finite even for cnt<=1

    # "next frame" views via a single lane rotate per array (wrap col masked by pm).
    p_next = pltpu.roll(p, T - 1, axis=1)            # p_next[:, t] == p[:, t+1]
    d = (p_next - p) - lse_diff                      # (C, T)
    sq = jnp.minimum(d * d, jnp.float32(threshold * threshold))

    s_next = pltpu.roll(s, T - 1, axis=1)
    ds = s_next - s
    ds2 = ds * ds

    if C >= 32:
        # Offload both channel reductions to the otherwise-idle MXU.
        ones_c = jnp.ones((1, C), jnp.float32)
        nrm2 = jnp.dot(ones_c, ds2, preferred_element_type=jnp.float32)   # (1, T)
    else:
        nrm2 = jnp.sum(ds2, axis=0, keepdims=True)                        # (1, T)
    nrm2 = jnp.maximum(nrm2, jnp.float32(0.0))        # guard sqrt against fp round-off
    simw = jnp.exp(-jnp.sqrt(nrm2) / jnp.float32(2.0 * sigma * sigma))

    wcol = simw * mkn * pm                            # (1, T) folded column weight

    if C >= 32:
        colsq = jnp.dot(ones_c, sq, preferred_element_type=jnp.float32)   # (1, T)
        o_ref[0] = jnp.sum(colsq * wcol, axis=1, keepdims=True)           # (1, 1)
    else:
        col = jnp.sum(sq * wcol, axis=1, keepdims=True)                   # (C, 1)
        o_ref[0] = jnp.sum(col, axis=0, keepdims=True)                    # (1, 1)


def _round_up(x, m):
    return ((x + m - 1) // m) * m


def _vmem_capacity_bytes():
    try:
        info = pltpu.get_tpu_info()
        for name in ("vmem_capacity_bytes", "vmem_size_bytes", "vmem_bytes"):
            v = getattr(info, name, None)
            if v:
                return int(v)
    except Exception:
        pass
    return 64 << 20   # conservative fallback (v7x per-TC capacity)


def gaussian_similarity_tmse(preds, gts, sim_index, masks, precise_sliding_num,
                             sample_rate=1, threshold=4, sigma=1.0, ignore_index=255):
    """preds: (N, C, T), gts: (N, T) int, sim_index: (N, C, T//sample_rate),
    masks: (N, T), precise_sliding_num: (N,). Returns scalar f32 loss."""
    N, C, T = preds.shape
    eps = 1e-10
    T_pad = _round_up(T, 128)

    # --- compaction indices (cumsum + scatter, no sort), built at padded length ---
    valid = gts != ignore_index                                   # (N, T)
    count = jnp.sum(valid.astype(jnp.int32), axis=1)              # (N,) = T' per batch
    dest = jnp.cumsum(valid.astype(jnp.int32), axis=1) - 1        # destination slot
    dest = jnp.where(valid, dest, T_pad)                          # invalid -> OOB (dropped)
    src = jnp.broadcast_to(jnp.arange(T, dtype=jnp.int32), (N, T))
    order_pad = jnp.zeros((N, T_pad), jnp.int32)
    order_pad = order_pad.at[jnp.arange(N)[:, None], dest].set(src, mode="drop")
    # order_pad[b, j] = source frame of the j-th valid frame (j < count[b]); 0 otherwise.
    # Fill-index 0 columns are zeroed inside the kernel by the count-based masks.

    # --- fused gathers: compaction + T-pad + nearest-neighbour upsample in one pass ---
    preds_c = jnp.take_along_axis(preds, order_pad[:, None, :], axis=2)          # (N,C,T_pad)
    sim_c = jnp.take_along_axis(sim_index, (order_pad // sample_rate)[:, None, :],
                                axis=2)                                          # (N,C,T_pad)
    mask_c = jnp.take_along_axis(masks.astype(jnp.float32), order_pad, axis=1)   # (N,T_pad)
    # Pre-shift the frame mask ("mask of frame t+1") so the kernel saves one XLU roll.
    mask_next = jnp.concatenate(
        [mask_c[:, 1:], jnp.zeros((N, 1), jnp.float32)], axis=1)[:, None, :]     # (N,1,T_pad)

    kernel = functools.partial(_tmse_kernel, threshold=float(threshold), sigma=float(sigma))

    # --- generation-aware VMEM budget: double-buffered input blocks + f32 temporaries ---
    block_in = (jnp.dtype(preds_c.dtype).itemsize + jnp.dtype(sim_c.dtype).itemsize) \
        * C * T_pad + 4 * T_pad
    temps = 10 * C * T_pad * 4                       # live f32 intermediates in the body
    need = 2 * block_in + temps + (2 << 20)
    cap = _vmem_capacity_bytes()
    vmem_limit = int(min(max(need, 16 << 20), int(0.75 * cap)))

    out = pl.pallas_call(
        kernel,
        out_shape=jax.ShapeDtypeStruct((N, 1, 1), jnp.float32),
        grid_spec=pltpu.PrefetchScalarGridSpec(
            num_scalar_prefetch=1,
            grid=(N,),
            in_specs=[
                pl.BlockSpec((1, C, T_pad), lambda b, cnt: (b, 0, 0)),
                pl.BlockSpec((1, C, T_pad), lambda b, cnt: (b, 0, 0)),
                pl.BlockSpec((1, 1, T_pad), lambda b, cnt: (b, 0, 0)),
            ],
            out_specs=pl.BlockSpec((1, 1, 1), lambda b, cnt: (b, 0, 0)),
        ),
        compiler_params=pltpu.CompilerParams(
            dimension_semantics=("parallel",),
            vmem_limit_bytes=vmem_limit,
        ),
    )(count.astype(jnp.int32), preds_c, sim_c, mask_next)

    sums = out[:, 0, 0]                                           # (N,) per-batch sums
    pairs = jnp.maximum(count - 1, 1).astype(jnp.float32)         # guard count<=1 (kernel emits 0)
    per_b = sums / (jnp.float32(C) * pairs)                       # mean over pairs, then C
    total = jnp.sum(per_b / (precise_sliding_num.astype(jnp.float32) + eps)) / N
    return total


def _ref_numpy(preds, gts, sim_index, masks, p_nums,
               sample_rate=1, threshold=4, sigma=1.0, ignore_index=255):
    """Pure-numpy transliteration of the PyTorch forward pass."""
    eps = 1e-10
    sim_up = np.repeat(sim_index, sample_rate, axis=-1)
    N = preds.shape[0]
    total = 0.0

    def lsm(x):  # log_softmax over axis=1 (temporal axis, as in the PyTorch code)
        m = x.max(axis=1, keepdims=True)
        z = x - m
        return z - np.log(np.exp(z).sum(axis=1, keepdims=True))

    for b in range(N):
        idx = np.where(gts[b] != ignore_index)[0]
        pred = preds[b][:, idx]
        sim = sim_up[b][:, idx]
        mask = masks[b][idx]
        diff = sim[:, 1:] - sim[:, :-1]
        similarity = np.exp(-np.linalg.norm(diff, axis=0) / (2 * sigma ** 2))
        la, lb = lsm(pred[:, 1:]), lsm(pred[:, :-1])
        loss = np.clip((la - lb) ** 2, 0.0, threshold ** 2) * mask[1:][None, :]
        loss = (similarity[None, :] * loss).mean(axis=-1)
        total += loss.mean() / (p_nums[b] + eps)
    return total / N


if __name__ == "__main__":
    key = jax.random.PRNGKey(0)
    N, C, T = 2, 8, 16
    k1, k2, k3, k4, k5 = jax.random.split(key, 5)

    preds = jax.random.normal(k1, (N, C, T), dtype=jnp.float32)
    gts = jax.random.randint(k3, (N, T), 0, C).astype(jnp.int32)
    # Sprinkle some ignore_index frames to exercise the filtering path
    gts = gts.at[0, 3].set(255).at[1, 10].set(255).at[1, 11].set(255)
    masks = (jax.random.uniform(k4, (N, T)) > 0.2).astype(jnp.float32)
    precise_sliding_num = jnp.array([1.0, 2.0], dtype=jnp.float32)

    loss_fn = jax.jit(gaussian_similarity_tmse,
                      static_argnames=("sample_rate", "threshold", "sigma", "ignore_index"))

    # Case 1: sample_rate = 1
    sim1 = jax.random.normal(k2, (N, C, T), dtype=jnp.float32)
    out1 = jax.block_until_ready(loss_fn(preds, gts, sim1, masks, precise_sliding_num))
    ref1 = _ref_numpy(np.asarray(preds), np.asarray(gts), np.asarray(sim1),
                      np.asarray(masks), np.asarray(precise_sliding_num), sample_rate=1)
    np.testing.assert_allclose(float(out1), float(ref1), rtol=5e-4, atol=1e-5)

    # Case 2: sample_rate = 2 (exercises the fused nearest-upsample gather)
    sim2 = jax.random.normal(k5, (N, C, T // 2), dtype=jnp.float32)
    out2 = jax.block_until_ready(
        loss_fn(preds, gts, sim2, masks, precise_sliding_num, sample_rate=2))
    ref2 = _ref_numpy(np.asarray(preds), np.asarray(gts), np.asarray(sim2),
                      np.asarray(masks), np.asarray(precise_sliding_num), sample_rate=2)
    np.testing.assert_allclose(float(out2), float(ref2), rtol=5e-4, atol=1e-5)

    print("KERNEL_OK")
</pallas_src>

<mosaic_0001>
module attributes {stable_mosaic.version = 11 : i64} {
  func.func @_tmse_kernel(%arg0: i32, %arg1: memref<2xi32, #tpu.memory_space<smem>>, %arg2: memref<1x8x128xf32, #tpu.memory_space<vmem>>, %arg3: memref<1x8x128xf32, #tpu.memory_space<vmem>>, %arg4: memref<1x1x128xf32, #tpu.memory_space<vmem>>, %arg5: memref<1x1x1xf32, #tpu.memory_space<vmem>>) attributes {dimension_semantics = [#tpu.dimension_semantics<parallel>], iteration_bounds = array<i64: 2>, scalar_prefetch = 1 : i64, scratch_operands = 0 : i64, tpu.core_type = #tpu.core_type<tc>, window_params = [{transform_indices = @transform_0, window_bounds = array<i64: 1, 8, 128>}, {transform_indices = @transform_1, window_bounds = array<i64: 1, 8, 128>}, {transform_indices = @transform_2, window_bounds = array<i64: 1, 1, 128>}, {transform_indices = @transform_3, window_bounds = array<i64: 1, 1, 1>}]} {
    %0 = arith.index_cast %arg0 : i32 to index
    %1 = memref.load %arg1[%0] : memref<2xi32, #tpu.memory_space<smem>>
    %c0 = arith.constant 0 : index
    %c0_0 = arith.constant 0 : index
    %c0_1 = arith.constant 0 : index
    %2 = vector.load %arg2[%c0, %c0_0, %c0_1] : memref<1x8x128xf32, #tpu.memory_space<vmem>>, vector<1x8x128xf32>
    %3 = vector.shape_cast %2 : vector<1x8x128xf32> to vector<8x128xf32>
    %c0_2 = arith.constant 0 : index
    %c0_3 = arith.constant 0 : index
    %c0_4 = arith.constant 0 : index
    %4 = vector.load %arg3[%c0_2, %c0_3, %c0_4] : memref<1x8x128xf32, #tpu.memory_space<vmem>>, vector<1x8x128xf32>
    %5 = vector.shape_cast %4 : vector<1x8x128xf32> to vector<8x128xf32>
    %c0_5 = arith.constant 0 : index
    %c0_6 = arith.constant 0 : index
    %c0_7 = arith.constant 0 : index
    %6 = vector.load %arg4[%c0_5, %c0_6, %c0_7] : memref<1x1x128xf32, #tpu.memory_space<vmem>>, vector<1x1x128xf32>
    %7 = vector.shape_cast %6 : vector<1x1x128xf32> to vector<1x128xf32>
    %8 = tpu.iota {dimensions = array<i32: 1>} : vector<1x128xi32>
    %9 = vector.broadcast %1 : i32 to vector<1x128xi32>
    %10 = arith.cmpi slt, %8, %9 : vector<1x128xi32>
    %c1_i32 = arith.constant 1 : i32
    %11 = arith.subi %1, %c1_i32 : i32
    %12 = vector.broadcast %11 : i32 to vector<1x128xi32>
    %13 = arith.cmpi slt, %8, %12 : vector<1x128xi32>
    %14 = arith.extui %13 : vector<1x128xi1> to vector<1x128xi32>
    %15 = arith.sitofp %14 : vector<1x128xi32> to vector<1x128xf32>
    %cst = arith.constant -1.000000e+30 : f32
    %16 = vector.shape_cast %10 : vector<1x128xi1> to vector<1x128xi1>
    %17 = vector.broadcast %16 : vector<1x128xi1> to vector<8x128xi1>
    %18 = vector.broadcast %cst : f32 to vector<8x128xf32>
    %19 = arith.select %17, %3, %18 : vector<8x128xi1>, vector<8x128xf32>
    %cst_8 = arith.constant dense<0xFF800000> : vector<8xf32>
    %20 = vector.multi_reduction <maximumf>, %19, %cst_8 [1] : vector<8x128xf32> to vector<8xf32>
    %21 = vector.shape_cast %20 : vector<8xf32> to vector<8x1xf32>
    %22 = vector.broadcast %21 : vector<8x1xf32> to vector<8x128xf32>
    %23 = arith.subf %19, %22 : vector<8x128xf32>
    %24 = math.exp %23 : vector<8x128xf32>
    %cst_9 = arith.constant dense<0.000000e+00> : vector<8xf32>
    %25 = vector.multi_reduction <add>, %24, %cst_9 [1] : vector<8x128xf32> to vector<8xf32>
    %26 = vector.shape_cast %25 : vector<8xf32> to vector<8x1xf32>
    %27 = vector.extract_strided_slice %24 {offsets = [0, 0], sizes = [8, 1], strides = [1, 1]} : vector<8x128xf32> to vector<8x1xf32>
    %28 = arith.subf %26, %27 : vector<8x1xf32>
    %cst_10 = arith.constant 1.000000e-30 : f32
    %29 = vector.broadcast %cst_10 : f32 to vector<8x1xf32>
    %30 = arith.maximumf %28, %29 : vector<8x1xf32>
    %31 = vector.broadcast %15 : vector<1x128xf32> to vector<8x128xf32>
    %32 = arith.mulf %24, %31 : vector<8x128xf32>
    %cst_11 = arith.constant dense<0.000000e+00> : vector<8xf32>
    %33 = vector.multi_reduction <add>, %32, %cst_11 [1] : vector<8x128xf32> to vector<8xf32>
    %34 = vector.shape_cast %33 : vector<8xf32> to vector<8x1xf32>
    %cst_12 = arith.constant 1.000000e-30 : f32
    %35 = vector.broadcast %cst_12 : f32 to vector<8x1xf32>
    %36 = arith.maximumf %34, %35 : vector<8x1xf32>
    %37 = math.log %30 : vector<8x1xf32>
    %38 = math.log %36 : vector<8x1xf32>
    %39 = arith.subf %37, %38 : vector<8x1xf32>
    %c127_i32 = arith.constant 127 : i32
    %40 = tpu.dynamic_rotate %3 by %c127_i32 dim 1 : vector<8x128xf32>, i32 -> vector<8x128xf32>
    %41 = arith.subf %40, %3 : vector<8x128xf32>
    %42 = vector.broadcast %39 : vector<8x1xf32> to vector<8x128xf32>
    %43 = arith.subf %41, %42 : vector<8x128xf32>
    %44 = arith.mulf %43, %43 : vector<8x128xf32>
    %cst_13 = arith.constant 1.600000e+01 : f32
    %45 = vector.broadcast %cst_13 : f32 to vector<8x128xf32>
    %46 = arith.minimumf %44, %45 : vector<8x128xf32>
    %c127_i32_14 = arith.constant 127 : i32
    %47 = tpu.dynamic_rotate %5 by %c127_i32_14 dim 1 : vector<8x128xf32>, i32 -> vector<8x128xf32>
    %48 = arith.subf %47, %5 : vector<8x128xf32>
    %49 = arith.mulf %48, %48 : vector<8x128xf32>
    %cst_15 = arith.constant dense<0.000000e+00> : vector<128xf32>
    %50 = vector.multi_reduction <add>, %49, %cst_15 [0] : vector<8x128xf32> to vector<128xf32>
    %51 = vector.shape_cast %50 : vector<128xf32> to vector<1x128xf32>
    %cst_16 = arith.constant 0.000000e+00 : f32
    %52 = vector.broadcast %cst_16 : f32 to vector<1x128xf32>
    %53 = arith.maximumf %51, %52 : vector<1x128xf32>
    %54 = math.sqrt %53 : vector<1x128xf32>
    %cst_17 = arith.constant 0.000000e+00 : f32
    %55 = vector.broadcast %cst_17 : f32 to vector<1x128xf32>
    %56 = arith.subf %55, %54 : vector<1x128xf32>
    %cst_18 = arith.constant 2.000000e+00 : f32
    %57 = vector.broadcast %cst_18 : f32 to vector<1x128xf32>
    %58 = arith.divf %56, %57 : vector<1x128xf32>
    %59 = math.exp %58 : vector<1x128xf32>
    %60 = arith.mulf %59, %7 : vector<1x128xf32>
    %61 = arith.mulf %60, %15 : vector<1x128xf32>
    %62 = vector.broadcast %61 : vector<1x128xf32> to vector<8x128xf32>
    %63 = arith.mulf %46, %62 : vector<8x128xf32>
    %cst_19 = arith.constant dense<0.000000e+00> : vector<8xf32>
    %64 = vector.multi_reduction <add>, %63, %cst_19 [1] : vector<8x128xf32> to vector<8xf32>
    %65 = vector.shape_cast %64 : vector<8xf32> to vector<8x1xf32>
    %cst_20 = arith.constant dense<0.000000e+00> : vector<1xf32>
    %66 = vector.multi_reduction <add>, %65, %cst_20 [0] : vector<8x1xf32> to vector<1xf32>
    %67 = vector.shape_cast %66 : vector<1xf32> to vector<1x1xf32>
    %c0_21 = arith.constant 0 : index
    %c0_22 = arith.constant 0 : index
    %c0_23 = arith.constant 0 : index
    %68 = vector.load %arg5[%c0_21, %c0_22, %c0_23] : memref<1x1x1xf32, #tpu.memory_space<vmem>>, vector<1x1x1xf32>
    %69 = vector.shape_cast %68 : vector<1x1x1xf32> to vector<1x1xf32>
    %70 = vector.shape_cast %67 : vector<1x1xf32> to vector<1x1x1xf32>
    tpu.vector_store %arg5[%c0_21, %c0_22, %c0_23], %70 {strides = array<i32>} : memref<1x1x1xf32, #tpu.memory_space<vmem>>, vector<1x1x1xf32>,
    return
  }
  func.func @transform_0(%arg0: i32, %arg1: memref<2xi32, #tpu.memory_space<smem>>) -> (i32, i32, i32) {
    %c0_i32 = arith.constant 0 : i32
    %c0_i32_0 = arith.constant 0 : i32
    %c0_i32_1 = arith.constant 0 : i32
    return %arg0, %c0_i32, %c0_i32_0 : i32, i32, i32
  }
  func.func @transform_1(%arg0: i32, %arg1: memref<2xi32, #tpu.memory_space<smem>>) -> (i32, i32, i32) {
    %c0_i32 = arith.constant 0 : i32
    %c0_i32_0 = arith.constant 0 : i32
    %c0_i32_1 = arith.constant 0 : i32
    return %arg0, %c0_i32, %c0_i32_0 : i32, i32, i32
  }
  func.func @transform_2(%arg0: i32, %arg1: memref<2xi32, #tpu.memory_space<smem>>) -> (i32, i32, i32) {
    %c0_i32 = arith.constant 0 : i32
    %c0_i32_0 = arith.constant 0 : i32
    %c0_i32_1 = arith.constant 0 : i32
    return %arg0, %c0_i32, %c0_i32_0 : i32, i32, i32
  }
  func.func @transform_3(%arg0: i32, %arg1: memref<2xi32, #tpu.memory_space<smem>>) -> (i32, i32, i32) {
    %c0_i32 = arith.constant 0 : i32
    %c0_i32_0 = arith.constant 0 : i32
    %c0_i32_1 = arith.constant 0 : i32
    return %arg0, %c0_i32, %c0_i32_0 : i32, i32, i32
  }
}

</mosaic_0001>

<bundles_post_ra>
// kernel: gaussian_similarity_tmse.1
= control target key start
LH: loop header
LB: loop body
LE: loop exit
PB: predicated region body
PF: predicated region fallthrough
CT: control target
= control target key end

     0   :  { %s478_s0 = inlined_call_operand.vmem [shape: s32[2], index: 0, kind: input, shape index: {}]   ;;  %s479_s1 = inlined_call_operand.vmem [shape: f32[2,8,128], index: 1, kind: input, shape index: {}]   ;;  %s480_s2 = inlined_call_operand.vmem [shape: f32[2,8,128], index: 2, kind: input, shape index: {}]   ;;  %s481_s3 = inlined_call_operand.vmem [shape: f32[2,1,128], index: 3, kind: input, shape index: {}]   ;;  %s482_s4 = inlined_call_operand.vmem [shape: f32[2,1,1], index: 4, kind: output, shape index: {}]  }
   0x1   :  { %s9_s17 = sshll.u32 %s478_s0, 4  ;;  %s10_s17 = int_to_ptr.vmem [resolvable:$true] %s9_s17 }
   0x2   :  { %s389_s18 = scalar_lea.vmem %s10_s17, 16  ;;  %p394_p1 = scmp.lt.s32.totalorder %s10_s17, %s10_s17 }
   0x3   :  { %p390_p0 = scmp.ne.s32.totalorder %s10_s17, %s389_s18  ;;  %p395_p2 = scmp.lt.s32.totalorder %s389_s18, %s389_s18 }
   0x5   :  { %p396_p3 = por %p395_p2, %p394_p1 }
   0x7   :  { %p397_p4 = pnand %p396_p3, %p390_p0 }
   0x9   :  { %400 = shalt.err (!%p397_p4)  }
   0xa   :  { %s411_s19 = smov [#allocation3]  }
   0xb   :  { %12 = dma.vmem_to_smem %s10_s17, 16, %s411_s19, [#allocation2] }
   0xc   :  { %405 = dma.done.wait [#allocation2], 16 }
   0xd   :  { %406 = vsyncadd [#allocation2], 4294967280 }
   0xe   :  { %14 = sfence }
   0xf   :  { %s443_s20 = smov 0  }
  0x10 LB: > { %s355_s0 = sadd.s32 4294967295, %s409_s20   ;;  %p359_p5 = scmp.ge.s32.totalorder %s409_s20, 1  ;;  %s409_s20 = sphi %s443_s20, %s20_s20  }
  0x11   : > { %p160_p6 = scmp.lt.s32.totalorder %s409_s20, 3 }
  0x13   : > { %p161_p7 = pnand %p359_p5, %p160_p6 }
  0x14   : > { %p188_p8 = scmp.lt.s32.totalorder (!%p161_p7), %s355_s0, 1  ;;  %s202_s21 = sld [smem:[#allocation3 + %s355_s0]] (!%p161_p7) }
  0x15   : > { %164 = sbr.rel (%p161_p7) target bundleno = 632 (0x278), region = 32  ;;  %s413_s30 = smov (!%p161_p7), 127  }
  0x1a   : > { %v206_v0 = vlaneseq  ;;  %s484_s0 = smov (!%p188_p8, %s355_s0), 1  ;;  %v208_v3 = vstv %s202_s21  ;;  %s362_s26 = sadd.s32 4294967295, %s202_s21  ;;  %v412_v9 = vmov 0.0   ;;  %v414_v14 = vmov 0  }
  0x1b   : > { %s360_s22 = sshll.u32 %s484_s0, 3  ;;  %v211_v5 = vstv %s362_s26  ;;  %378 = vset.pattern.permute.xlu0 %v414_v14  ;;  %s198_s7 = scalar_lea.vmem %s481_s3, %s484_s0  ;;  %vm285_vm4 = vcmask 0  }
  0x1c   : > { %v207_v1 = vand.u32 127, %v206_v0  ;;  %s191_s25 = scalar_lea.vmem %s479_s1, %s360_s22  ;;  %s195_s29 = scalar_lea.vmem %s480_s2, %s360_s22  ;;  %v205_v45 = vld [vmem:[%s198_s7] sm:$0x1]  ;;  %v273_v48 = vshrl.u32 %v206_v0, 7 }
  0x1d   : > { %v458_v2 = vld [vmem:[%s191_s25] sm:$0xff]  ;;  %s201_s10 = scalar_lea.vmem %s482_s4, %s484_s0 }
  0x1e   : > { %vm209_vm0 = vcmp.lt.s32.totalorder %v207_v1, %v208_v3  ;;  %vm212_vm1 = vcmp.lt.s32.totalorder %v207_v1, %v211_v5  ;;  %v204_v13 = vld [vmem:[%s195_s29] sm:$0xff]  ;;  %v274_v52 = vsub.s32 0, %v273_v48 }
  0x1f   : > { %v217_v4 = vsel %vm209_vm0, %v458_v2, -1e+30  ;;  %v363_v10 = vsel %vm212_vm1, 1.0, %v412_v9 }
  0x20   : > { %218 = vmax.xlane.f32.xlu0 %v217_v4 }
  0xa9   : > { %v219_v6 = vpop.xlane.xlu0 %218 }
  0xaa   : > { %v220_v7 = vsub.f32 %v217_v4, %v219_v6 }
  0xac   : > { %v221_v8 = vmul.f32 1.442695, %v220_v7 }
  0xae   : > { %379 = vpow2.f32 %v221_v8 }
  0xbb   : > { %v380_v11 = vpop.eup %379 }
  0xbc   : > { %223 = vadd.xlane.f32.xlu0 %v380_v11  ;;  %v227_v12 = vmul.f32 %v380_v11, %v363_v10 }
  0xbe   : > { %228 = vadd.xlane.f32.xlu1 %v227_v12 }
  0xcf   : > { %247 = vrot.lane.b32.xlu1 %v204_v13, %s413_s30 }
  0xd3   : > { %236 = vrot.lane.b32.xlu1 %v458_v2, %s413_s30 }
 0x145   : > { %v224_v15 = vpop.xlane.xlu0 %223 }
 0x146   : > { %v225_v16 = vsub.f32 %v224_v15, %v380_v11 }
 0x147   : > { %v229_v17 = vpop.xlane.xlu1 %228 }
 0x148   : > { %v226_v18 = vmax.f32 %v225_v16, 1e-30  ;;  %v230_v19 = vmax.f32 %v229_v17, 1e-30 }
 0x14a   : > { %381 = vlog2.f32 %v226_v18 }
 0x14b   : > { %383 = vlog2.f32 %v230_v19  ;;  %v248_v25 = vpop.permute.xlu1 %247 }
 0x14c   : > { %v249_v26 = vsub.f32 %v248_v25, %v204_v13 }
 0x14e   : > { %v250_v27 = vmul.f32 %v249_v26, %v249_v26 }
 0x14f   : > { %v237_v44 = vpop.permute.xlu1 %236 }
 0x150   : > { %v251_v28 = vrot.slane %v250_v27, 4  ;;  %v238_v46 = vsub.f32 %v237_v44, %v458_v2 }
 0x152   : > { %v252_v29 = vadd.f32 %v251_v28, %v250_v27 }
 0x154   : > { %v253_v30 = vrot.slane %v252_v29, 2 }
 0x156   : > { %v254_v31 = vadd.f32 %v253_v30, %v252_v29 }
 0x157   : > { %v382_v20 = vpop.eup %381 }
 0x158   : > { %v384_v21 = vpop.eup %383  ;;  %v232_v22 = vmul.f32 0.6931472, %v382_v20  ;;  %v255_v32 = vrot.slane %v254_v31, 1 }
 0x159   : > { %v234_v23 = vmul.f32 0.6931472, %v384_v21 }
 0x15a   : > { %v256_v33 = vadd.f32 %v255_v32, %v254_v31 }
 0x15b   : > { %v235_v24 = vsub.f32 %v232_v22, %v234_v23 }
 0x15c   : > { %v257_v34 = vmax.f32 %v256_v33, 0.0 }
 0x15d   : > { %241 = vperm.xlu0 %378, %v235_v24  }
 0x15e   : > { %385 = vrsqrt.f32 %v257_v34  ;;  %vm260_vm2 = vcmp.eq.f32.partialorder %v257_v34, inf  ;;  %v263_v37 = vand.u32 2147483648, %v257_v34  ;;  %vm262_vm3 = vcmp.eq.f32.partialorder %v257_v34, 0.0 }
 0x16b   : > { %v386_v35 = vpop.eup %385 }
 0x16c   : > { %v259_v36 = vmul.f32 %v386_v35, %v257_v34 }
 0x16e   : > { %v261_v38 = vsel %vm260_vm2, %v257_v34, %v259_v36 }
 0x16f   : > { %v264_v39 = vsel %vm262_vm3, %v263_v37, %v261_v38 }
 0x170   : > { %v265_v40 = vsub.f32 0.0, %v264_v39 }
 0x172   : > { %v267_v41 = vmul.f32 0.5, %v265_v40 }
 0x174   : > { %v268_v42 = vmul.f32 1.442695, %v267_v41 }
 0x176   : > { %387 = vpow2.f32 %v268_v42 }
 0x183   : > { %v388_v43 = vpop.eup %387 }
 0x184   : > { %v270_v47 = vmul.f32 %v388_v43, %v205_v45 }
 0x186   : > { %v271_v51 = vmul.f32 %v363_v10, %v270_v47 }
 0x188   : > { %v275_v55 = vrot.slane %v271_v51, %v274_v52 }
 0x1d8   : > { %v242_v49 = vpop.permute.xlu0 %241 }
 0x1d9   : > { %v244_v50 = vsub.f32 %v238_v46, %v242_v49 }
 0x1db   : > { %v245_v53 = vmul.f32 %v244_v50, %v244_v50 }
 0x1dd   : > { %v246_v54 = vmin.f32 %v245_v53, 16.0 }
 0x1df   : > { %v276_v56 = vmul.f32 %v275_v55, %v246_v54 }
 0x1e1   : > { %277 = vadd.xlane.f32.xlu1 %v276_v56 }
 0x26a   : > { %v278_v57 = vpop.xlane.xlu1 %277 }
 0x26b   : > { %v279_v58 = vrot.slane %v278_v57, 4 }
 0x26d   : > { %v280_v59 = vadd.f32 %v279_v58, %v278_v57 }
 0x26f   : > { %v281_v60 = vrot.slane %v280_v59, 2 }
 0x271   : > { %v282_v61 = vadd.f32 %v281_v60, %v280_v59 }
 0x273   : > { %v283_v62 = vrot.slane %v282_v61, 1 }
 0x275   : > { %v284_v63 = vadd.f32 %v283_v62, %v282_v61 }
 0x277   : > { %286 = vst.msk [vmem:[%s201_s10] sm:$0x1] %vm285_vm4, %v284_v63 }
 0x278 PF: > { %s20_s20 = sadd.s32 1, %s409_s20  }
 0x279   : > { %p17_p9 = scmp.ge.s32.totalorder %s20_s20, 4  }
 0x27b   :  { %19 = sbr.rel (!%p17_p9) target bundleno = 16 (0x10), region = 68 }

</bundles_post_ra>
